<compile_context>
chip_gen: v7x
topology: tpu7x:2x2x1
jax: 0.10.0
libtpu: 0.0.40
codegen_flags: <defaults>
</compile_context>

<pallas_src>
import jax
import jax.numpy as jnp
from jax import lax
from jax.experimental import pallas as pl
from jax.experimental.pallas import tpu as pltpu

_LANES = 128
_SUBLANES = 8


def _round_up(x, m):
    return ((x + m - 1) // m) * m


def _round_down(x, m):
    return (x // m) * m


def _cdiv(a, b):
    return -(-a // b)


def _num_tensorcores():
    """Best-effort TensorCore count behind one JAX device (v7x megacore -> 2)."""
    try:
        dev = jax.devices()[0]
        if dev.platform != "tpu":
            return 1
        kind = str(getattr(dev, "device_kind", "")).lower()
        if "v7" in kind or "7x" in kind:
            return 2
    except Exception:
        pass
    return 1


def _make_kl_kernel(*, tile_r, chunk_r, C, R, tiles_per_split, needs_mask):
    """Builds the per-grid-step kernel; tiling parameters are trace-time ints."""
    fold = chunk_r > 0
    n_chunks = (tile_r // chunk_r) if fold else 1

    def term_of(m, t, row0, masked):
        m = m.astype(jnp.float32)
        t = t.astype(jnp.float32)
        t2 = t + t
        # 0.5 * (std^2 + mean^2 - log(std^2) - 1) with std = exp(t)
        #   = 0.5 * (exp(2t) + m^2 - 2t - 1)      (exp -> EUP, rest is VPU FMAs)
        term = 0.5 * (jnp.exp(t2) + m * m - t2 - 1.0)
        if masked:
            rows = lax.broadcasted_iota(jnp.int32, term.shape, 0) + row0
            term = jnp.where(rows < R, term, 0.0)
        return term

    def kernel(mean_ref, logstd_ref, out_ref):
        c = pl.program_id(0)                 # split (TensorCore) axis
        i = pl.program_id(1)                 # reduction axis (innermost)

        @pl.when(i == 0)
        def _():
            out_ref[...] = jnp.zeros_like(out_ref)

        base_row = (c * tiles_per_split + i) * tile_r

        if not fold:
            # Tiny input (< 1 sublane group): one full-array block, direct add.
            out_ref[...] += term_of(mean_ref[...], logstd_ref[...],
                                    base_row, needs_mask)
            return

        def contrib(masked):
            if n_chunks == 1:
                term = term_of(mean_ref[...], logstd_ref[...], base_row, masked)
                return term.reshape(-1, _SUBLANES, C).sum(axis=0)

            def body(j, acc):
                r0 = pl.multiple_of(j * chunk_r, chunk_r)
                term = term_of(mean_ref[pl.ds(r0, chunk_r), :],
                               logstd_ref[pl.ds(r0, chunk_r), :],
                               base_row + r0, masked)
                return acc + term.reshape(-1, _SUBLANES, C).sum(axis=0)

            return lax.fori_loop(0, n_chunks, body,
                                 jnp.zeros((_SUBLANES, C), jnp.float32),
                                 unroll=True)

        if not needs_mask:
            out_ref[...] += contrib(masked=False)
        else:
            is_full = base_row + tile_r <= R

            @pl.when(is_full)
            def _():
                out_ref[...] += contrib(masked=False)

            @pl.when(jnp.logical_not(is_full))
            def _():
                out_ref[...] += contrib(masked=True)

    return kernel


def kl_loss(mean, log_std, *, target_block_bytes=1 << 20, num_splits=None):
    """Pallas KL(N(mean, exp(log_std)^2) || N(0,1)): sum over features, mean over batch."""
    assert mean.ndim == 2 and mean.shape == log_std.shape, (mean.shape, log_std.shape)
    assert mean.dtype == log_std.dtype, (mean.dtype, log_std.dtype)
    B, D = mean.shape
    total = B * D
    itemsize = mean.dtype.itemsize
    sub = 16 if itemsize < 4 else 8          # bf16 packs 16 rows per sublane tile

    # Lane-dense (rows, 128) view when the flat size allows it (free reshape,
    # no HBM copy); otherwise use the natural (B, D) layout.  Never pad in HBM.
    if total % _LANES == 0 and total // _LANES >= sub:
        R, C = total // _LANES, _LANES
        m2 = mean.reshape(R, C)
        t2 = log_std.reshape(R, C)
    else:
        R, C = B, D
        m2, t2 = mean, log_std

    C_eff = _round_up(C, _LANES)             # physical lanes per row in VMEM

    if R < sub:
        # Tiny input: a single full-array block, no folding.
        tile_r, chunk_r, acc_rows = R, 0, R
    else:
        # Inner fold chunk: <=16 f32 vregs per operand -> no vreg spills.
        chunk_r = max(sub, min(_round_down((16 * 1024) // C_eff, sub), 512,
                               _round_down(R, sub)))
        # Grid-step block: ~target_block_bytes per operand (default 1 MiB).
        rows_target = max(chunk_r, (target_block_bytes // itemsize) // C_eff)
        tile_r = max(chunk_r, min(_round_down(rows_target, chunk_r),
                                  _round_down(R, chunk_r)))
        acc_rows = _SUBLANES

    total_tiles = _cdiv(R, tile_r)
    if num_splits is None:
        num_splits = _num_tensorcores()      # 2 on v7x, 1 on v5e/v6e
    num_splits = max(1, int(num_splits))
    if total_tiles < num_splits or total_tiles % num_splits != 0:
        num_splits = 1                       # keep every grid step useful
    tiles_per_split = total_tiles // num_splits
    needs_mask = num_splits * tiles_per_split * tile_r > R

    kernel = _make_kl_kernel(tile_r=tile_r, chunk_r=chunk_r, C=C, R=R,
                             tiles_per_split=tiles_per_split,
                             needs_mask=needs_mask)

    def in_map(c, i):
        return (c * tiles_per_split + i, 0)

    cost = pl.CostEstimate(
        flops=8 * total,
        transcendentals=total,
        bytes_accessed=2 * total * itemsize + num_splits * acc_rows * C * 4,
    )

    partials = pl.pallas_call(
        kernel,
        out_shape=jax.ShapeDtypeStruct((num_splits * acc_rows, C), jnp.float32),
        grid_spec=pltpu.PrefetchScalarGridSpec(
            num_scalar_prefetch=0,
            grid=(num_splits, tiles_per_split),
            in_specs=[
                pl.BlockSpec((tile_r, C), in_map),
                pl.BlockSpec((tile_r, C), in_map),
            ],
            out_specs=pl.BlockSpec((acc_rows, C), lambda c, i: (c, 0)),
        ),
        compiler_params=pltpu.CompilerParams(
            # Leading axis shards across TensorCores on v7x; trailing axis is
            # the in-core reduction over row tiles (output block stays resident).
            dimension_semantics=("parallel", "arbitrary"),
        ),
        cost_estimate=cost,
    )(m2, t2)

    # Final tiny reduce of the lane-dense partials + batch normalization.
    return jnp.sum(partials) / jnp.float32(B)


def _reference(mean, log_std):
    m = mean.astype(jnp.float32)
    std = jnp.exp(log_std.astype(jnp.float32))
    return (0.5 * (std ** 2 + m ** 2 - jnp.log(std ** 2) - 1.0)).sum(axis=1).mean()


if __name__ == "__main__":
    # 1) Shapes consistent with the VAE module: hidden_dim=32 -> latent
    #    mean/log_std of shape (batch, 32); batch=2.  (The original image input
    #    x would be (2, 4, 32, 32) -> encoder -> (2, 64) -> chunk into 2x(2,32).)
    k0, k1 = jax.random.split(jax.random.PRNGKey(0))
    mean = jax.random.normal(k0, (2, 32), dtype=jnp.float32)
    log_std = 0.5 * jax.random.normal(k1, (2, 32), dtype=jnp.float32)
    out = jax.block_until_ready(kl_loss(mean, log_std))
    ref = _reference(mean, log_std)
    assert jnp.allclose(out, ref, rtol=1e-5, atol=1e-5), (out, ref)

    # 2) Lane-dense, multi-chunk streaming fold inside a single grid step.
    k2, k3 = jax.random.split(jax.random.PRNGKey(1))
    mean2 = jax.random.normal(k2, (64, 512), dtype=jnp.float32)
    log_std2 = 0.5 * jax.random.normal(k3, (64, 512), dtype=jnp.float32)
    out2 = jax.block_until_ready(kl_loss(mean2, log_std2))
    ref2 = _reference(mean2, log_std2)
    assert jnp.allclose(out2, ref2, rtol=1e-4, atol=1e-4), (out2, ref2)

    # 3) Ragged final tile: multi-step accumulation + in-kernel masked tail.
    k4, k5 = jax.random.split(jax.random.PRNGKey(2))
    mean3 = jax.random.normal(k4, (72, 400), dtype=jnp.float32)
    log_std3 = 0.5 * jax.random.normal(k5, (72, 400), dtype=jnp.float32)
    out3 = jax.block_until_ready(kl_loss(mean3, log_std3))
    ref3 = _reference(mean3, log_std3)
    assert jnp.allclose(out3, ref3, rtol=1e-4, atol=1e-4), (out3, ref3)

    # 4) bf16 inputs on the half-HBM-traffic path (f32 math inside the kernel).
    k6, k7 = jax.random.split(jax.random.PRNGKey(3))
    mean4 = jax.random.normal(k6, (32, 256), dtype=jnp.bfloat16)
    log_std4 = (0.5 * jax.random.normal(k7, (32, 256))).astype(jnp.bfloat16)
    out4 = jax.block_until_ready(kl_loss(mean4, log_std4))
    ref4 = _reference(mean4, log_std4)
    assert jnp.allclose(out4, ref4, rtol=1e-3, atol=1e-3), (out4, ref4)

    print("KERNEL_OK")
</pallas_src>

<mosaic_0001>
module attributes {stable_mosaic.version = 11 : i64} {
  func.func @kernel(%arg0: i32, %arg1: i32, %arg2: memref<2x32xf32, #tpu.memory_space<vmem>>, %arg3: memref<2x32xf32, #tpu.memory_space<vmem>>, %arg4: memref<2x32xf32, #tpu.memory_space<vmem>>) attributes {dimension_semantics = [#tpu.dimension_semantics<parallel>, #tpu.dimension_semantics<arbitrary>], iteration_bounds = array<i64: 1, 1>, scalar_prefetch = 0 : i64, scratch_operands = 0 : i64, tpu.core_type = #tpu.core_type<tc>, window_params = [{transform_indices = @transform_0, window_bounds = array<i64: 2, 32>}, {transform_indices = @transform_1, window_bounds = array<i64: 2, 32>}, {transform_indices = @transform_2, window_bounds = array<i64: 2, 32>}]} {
    %c0_i32 = arith.constant 0 : i32
    %0 = arith.cmpi eq, %arg1, %c0_i32 : i32
    %1 = arith.extui %0 : i1 to i32
    %c0_i32_0 = arith.constant 0 : i32
    %2 = arith.cmpi ne, %1, %c0_i32_0 : i32
    scf.if %2 {
      %cst_9 = arith.constant 0.000000e+00 : f32
      %17 = vector.broadcast %cst_9 : f32 to vector<2x32xf32>
      %c0_10 = arith.constant 0 : index
      %c0_11 = arith.constant 0 : index
      %18 = vector.load %arg4[%c0_10, %c0_11] : memref<2x32xf32, #tpu.memory_space<vmem>>, vector<2x32xf32>
      tpu.vector_store %arg4[%c0_10, %c0_11], %17 {strides = array<i32>} : memref<2x32xf32, #tpu.memory_space<vmem>>, vector<2x32xf32>,
    } else {
    }
    %c0 = arith.constant 0 : index
    %c0_1 = arith.constant 0 : index
    %3 = vector.load %arg4[%c0, %c0_1] : memref<2x32xf32, #tpu.memory_space<vmem>>, vector<2x32xf32>
    %c0_2 = arith.constant 0 : index
    %c0_3 = arith.constant 0 : index
    %4 = vector.load %arg2[%c0_2, %c0_3] : memref<2x32xf32, #tpu.memory_space<vmem>>, vector<2x32xf32>
    %c0_4 = arith.constant 0 : index
    %c0_5 = arith.constant 0 : index
    %5 = vector.load %arg3[%c0_4, %c0_5] : memref<2x32xf32, #tpu.memory_space<vmem>>, vector<2x32xf32>
    %6 = arith.addf %5, %5 : vector<2x32xf32>
    %7 = math.exp %6 : vector<2x32xf32>
    %8 = arith.mulf %4, %4 : vector<2x32xf32>
    %9 = arith.addf %7, %8 : vector<2x32xf32>
    %10 = arith.subf %9, %6 : vector<2x32xf32>
    %cst = arith.constant 1.000000e+00 : f32
    %11 = vector.broadcast %cst : f32 to vector<2x32xf32>
    %12 = arith.subf %10, %11 : vector<2x32xf32>
    %cst_6 = arith.constant 5.000000e-01 : f32
    %13 = vector.broadcast %cst_6 : f32 to vector<2x32xf32>
    %14 = arith.mulf %13, %12 : vector<2x32xf32>
    %15 = arith.addf %3, %14 : vector<2x32xf32>
    %c0_7 = arith.constant 0 : index
    %c0_8 = arith.constant 0 : index
    %16 = vector.load %arg4[%c0_7, %c0_8] : memref<2x32xf32, #tpu.memory_space<vmem>>, vector<2x32xf32>
    tpu.vector_store %arg4[%c0_7, %c0_8], %15 {strides = array<i32>} : memref<2x32xf32, #tpu.memory_space<vmem>>, vector<2x32xf32>,
    return
  }
  func.func @transform_0(%arg0: i32, %arg1: i32) -> (i32, i32) {
    %c1_i32 = arith.constant 1 : i32
    %0 = arith.muli %arg0, %c1_i32 : i32
    %1 = arith.addi %0, %arg1 : i32
    %c0_i32 = arith.constant 0 : i32
    %c0_i32_0 = arith.constant 0 : i32
    return %1, %c0_i32 : i32, i32
  }
  func.func @transform_1(%arg0: i32, %arg1: i32) -> (i32, i32) {
    %c1_i32 = arith.constant 1 : i32
    %0 = arith.muli %arg0, %c1_i32 : i32
    %1 = arith.addi %0, %arg1 : i32
    %c0_i32 = arith.constant 0 : i32
    %c0_i32_0 = arith.constant 0 : i32
    return %1, %c0_i32 : i32, i32
  }
  func.func @transform_2(%arg0: i32, %arg1: i32) -> (i32, i32) {
    %c0_i32 = arith.constant 0 : i32
    %c0_i32_0 = arith.constant 0 : i32
    return %arg0, %c0_i32 : i32, i32
  }
}

</mosaic_0001>

<bundles_post_ra>
// kernel: tpu_custom_call.1
= control target key start
LH: loop header
LB: loop body
LE: loop exit
PB: predicated region body
PF: predicated region fallthrough
CT: control target
= control target key end

     0   :  { %7 = vsyncpa [#allocation3], 0  ;;  %s187_s0 = inlined_call_operand.hbm [shape: f32[2,32], index: 0, kind: input, shape index: {}]   ;;  %s188_s1 = inlined_call_operand.vmem [shape: f32[2,32], index: 1, kind: input, shape index: {}]   ;;  %s189_s2 = inlined_call_operand.hbm [shape: f32[2,32], index: 2, kind: output, shape index: {}]  }
   0x1   :  { %8 = vsyncpa [#allocation4], 0  ;;  %s140_s9 = smov [#allocation2]   ;;  %s92_s13 = scalar_lea.hbm %s187_s0, 32 }
   0x2   :  { %s18_s10 = sshll.u32 %s140_s9, 4  ;;  %p93_p0 = scmp.ne.s32.totalorder %s187_s0, %s92_s13  ;;  %s19_s10 = int_to_ptr.vmem [resolvable:$true] %s18_s10 }
   0x3   :  { %p96_p1 = scmp.lt.u32.totalorder %s92_s13, %s187_s0 }
   0x5   :  { %p98_p2 = pnand %p96_p1, %p93_p0 }
   0x7   :  { %101 = shalt.err (!%p98_p2)
}
   0x8   :  { %s102_s18 = scalar_lea.vmem %s19_s10, 32  ;;  %p107_p4 = scmp.lt.s32.totalorder %s19_s10, %s19_s10 }
   0x9   :  { %p103_p3 = scmp.ne.s32.totalorder %s19_s10, %s102_s18  ;;  %p108_p5 = scmp.lt.s32.totalorder %s102_s18, %s102_s18 }
   0xb   :  { %p109_p6 = por %p108_p5, %p107_p4 }
   0xd   :  { %p110_p7 = pnand %p109_p6, %p103_p3 }
   0xf   :  { %113 = shalt.err (!%p110_p7)
}
  0x10   :  { %21 = dma.hbm_to_vmem [thread:$0]  %s187_s0, 32, %s19_s10, [#allocation3]  }
  0x11   :  { %136 = dma.done.wait [#allocation3], 32  }
  0x12   :  { %137 = vsyncadd [#allocation3], 4294967264  ;;  %vm49_vm0 = vcmask 254976   ;;  %v141_v0 = vmov 0.0   ;;  %v53_v1 = vld [vmem:[%s188_s1] sm:$0x3] }
  0x13   :  { %50 = vst.msk [vmem:[#allocation5] sm:$0x3] %vm49_vm0, %v141_v0  ;;  %v54_v2 = vadd.f32 %v53_v1, %v53_v1  ;;  %v52_v4 = vld [vmem:[#allocation2] sm:$0x3]  ;;  %s142_s0 = smov [#allocation5]  }
  0x14   :  { %v57_v5 = vmul.f32 %v52_v4, %v52_v4  ;;  %s71_s23 = sshll.u32 %s142_s0, 4  ;;  %s72_s23 = int_to_ptr.vmem [resolvable:$true] %s71_s23 }
  0x15   :  { %v55_v3 = vmul.f32 1.442695, %v54_v2  ;;  %s114_s24 = scalar_lea.vmem %s72_s23, 32  ;;  %p119_p9 = scmp.lt.s32.totalorder %s72_s23, %s72_s23 }
  0x16   :  { %p115_p8 = scmp.ne.s32.totalorder %s72_s23, %s114_s24  ;;  %p120_p10 = scmp.lt.s32.totalorder %s114_s24, %s114_s24 }
  0x17   :  { %90 = vpow2.f32 %v55_v3 }
  0x18   :  { %p121_p11 = por %p120_p10, %p119_p9 }
  0x1a   :  { %v51_v10 = vld [vmem:[#allocation5] sm:$0x3]  ;;  %p122_p12 = pnand %p121_p11, %p115_p8 }
  0x21   :  { %v91_v6 = vpop.eup %90 }
  0x22   :  { %v58_v7 = vadd.f32 %v91_v6, %v57_v5 }
  0x24   :  { %v59_v8 = vsub.f32 %v58_v7, %v54_v2 }
  0x26   :  { %v86_v9 = vadd.f32 -1.0, %v59_v8 }
  0x28   :  { %v61_v11 = vmul.f32 0.5, %v86_v9 }
  0x2a   :  { %v62_v12 = vadd.f32 %v61_v11, %v51_v10 }
  0x2c   :  { %64 = vst.msk [vmem:[#allocation5] sm:$0x3] %vm49_vm0, %v62_v12 }
  0x2d   :  { %125 = shalt.err (!%p122_p12)
}
  0x2e   :  { %s126_s26 = scalar_lea.hbm %s189_s2, 32 }
  0x2f   :  { %p127_p13 = scmp.ne.s32.totalorder %s189_s2, %s126_s26  ;;  %p130_p0 = scmp.lt.u32.totalorder %s126_s26, %s189_s2 }
  0x31   :  { %p132_p1 = pnand %p130_p0, %p127_p13 }
  0x33   :  { %135 = shalt.err (!%p132_p1)
}
  0x34   :  { %74 = dma.vmem_to_hbm [thread:$0]  %s72_s23, 32, %s189_s2, [#allocation4]  }
  0x35   :  { %138 = dma.done.wait [#allocation4], 32  }
  0x36   :  { %139 = vsyncadd [#allocation4], 4294967264 }
  0x37   :  { %78 = vsyncpa [#allocation3], 1 }
  0x38   :  { %79 = vsyncpa [#allocation4], 1 }

</bundles_post_ra>
